<compile_context>
chip_gen: v7x
topology: tpu7x:2x2x1
jax: 0.10.0
libtpu: 0.0.40
codegen_flags: <defaults>
</compile_context>

<pallas_src>
import functools

import jax
import jax.numpy as jnp
from jax.experimental import pallas as pl
from jax.experimental.pallas import tpu as pltpu  # noqa: F401


# ----------------------------------------------------------------------------
# Fused bidirectional-GRU encoder kernel (single invocation, no grid)
# ----------------------------------------------------------------------------
def _encoder_kernel(gi_ref,                      # (S*B, 6H) pre-projected gate inputs
                                                  #   column layout [r_f r_b z_f z_b n_f n_b],
                                                  #   bwd half already time-reversed
                    whh_ref,                     # (2H, 6H)  block-interleaved hidden weights
                    bhh_ref,                     # (1, 6H)   hidden biases
                    wfc_ref,                     # (2H, H)   fc weight (pre-transposed)
                    bfc_ref,                     # (1, H)    fc bias
                    out_ref,                     # (S, B, 2H) fused outputs [fwd | bwd]
                    hid_ref,                     # (B, H)    tanh(fc(cat(h_f, h_b)))
                    *, seq_len, batch, hidden_dim):
    S, B, H = seq_len, batch, hidden_dim

    # Loop-invariant bias broadcast hoisted once (JAX does not CSE broadcast_in_dim).
    bhh = jnp.broadcast_to(bhh_ref[...], (B, 6 * H))

    # h = [h_fwd | h_bwd]  (B, 2H), lane-concatenated.
    h = jnp.zeros((B, 2 * H), jnp.float32)

    # Fully unrolled serial recurrence (S is small & static).
    for t in range(S):
        # One MXU push per step for both directions and all three gates:
        # fwd rows of whh only feed fwd gate columns, bwd rows only bwd columns.
        gh = jnp.dot(h, whh_ref[...], preferred_element_type=jnp.float32) + bhh
        # Lane-dense (B, 6H) slab for this step, loaded from VMEM at the use site.
        gi = gi_ref[pl.ds(t * B, B), :]

        # Column layout: [ r_f r_b | z_f z_b | n_f n_b ]  (each block H wide)
        rz = jax.nn.sigmoid(gi[:, :4 * H] + gh[:, :4 * H])    # r and z in one sigmoid
        r = rz[:, :2 * H]
        z = rz[:, 2 * H:]
        n = jnp.tanh(gi[:, 4 * H:] + r * gh[:, 4 * H:])       # b_hn is inside gh -> inside r*
        h = (1.0 - z) * n + z * h

        # Fused (S, B, 2H) output: fwd half at time t, bwd half at time S-1-t.
        out_ref[t, :, :H] = h[:, :H]
        out_ref[S - 1 - t, :, H:] = h[:, H:]

    # Fused fc + tanh on the final [h_fwd | h_bwd].
    hid = jnp.dot(h, wfc_ref[...], preferred_element_type=jnp.float32) + bfc_ref[...]
    hid_ref[...] = jnp.tanh(hid)


# ----------------------------------------------------------------------------
# One-time parameter re-layout (hoisted out of the per-call forward path)
# ----------------------------------------------------------------------------
def prepare_encoder_params(raw):
    """Re-layout PyTorch-style params into kernel layout.  Run once at init."""
    H = raw["w_hh_f"].shape[1]
    emb = raw["embedding"].astype(jnp.float32)

    # Folded embedding + input projection tables: (vocab, 3, H), gate order r,z,n.
    # Valid because dropout is identity in eval mode.
    def in_table(w_ih, b_ih):
        return (emb @ w_ih.T.astype(jnp.float32)
                + b_ih.astype(jnp.float32)).reshape(-1, 3, H)

    p_f = in_table(raw["w_ih_f"], raw["b_ih_f"])
    p_b = in_table(raw["w_ih_b"], raw["b_ih_b"])

    # Hidden weights packed block-interleaved: (2H, 6H); rows 0:H act on h_fwd,
    # rows H:2H act on h_bwd; column order = gate-major, direction-minor.
    whh_f = raw["w_hh_f"].reshape(3, H, H)     # (gate, out, in)
    whh_b = raw["w_hh_b"].reshape(3, H, H)
    whh = jnp.zeros((2 * H, 3, 2, H), jnp.float32)
    whh = whh.at[:H, :, 0, :].set(jnp.transpose(whh_f, (2, 0, 1)))   # (in, gate, out)
    whh = whh.at[H:, :, 1, :].set(jnp.transpose(whh_b, (2, 0, 1)))
    whh = whh.reshape(2 * H, 6 * H)

    bhh = jnp.stack([raw["b_hh_f"].reshape(3, H),
                     raw["b_hh_b"].reshape(3, H)], axis=1).reshape(1, 6 * H)

    return {
        "p_f": p_f, "p_b": p_b,
        "whh": whh, "bhh": bhh.astype(jnp.float32),
        "wfc": raw["w_fc"].T.astype(jnp.float32),               # (2H, H)
        "bfc": raw["b_fc"].reshape(1, H).astype(jnp.float32),   # (1, H)
    }


# ----------------------------------------------------------------------------
# Encoder_GRU forward
# ----------------------------------------------------------------------------
def encoder_gru_forward(prep, src):
    """src: (seq_len, batch) int32 token ids.  Returns (outputs, hidden)."""
    S, B = src.shape
    H = prep["wfc"].shape[1]

    # Row gather of pre-projected token tables (cheap XLA glue).  The backward
    # half is gathered with time-reversed indices so the kernel's per-step slab
    # is a single contiguous (B, 6H) load.
    gi_f = jnp.take(prep["p_f"], src, axis=0)            # (S, B, 3, H)
    gi_b = jnp.take(prep["p_b"], src[::-1], axis=0)      # (S, B, 3, H)
    gi = jnp.stack([gi_f, gi_b], axis=3).reshape(S * B, 6 * H)   # [r_f r_b z_f z_b n_f n_b]

    kernel = functools.partial(_encoder_kernel, seq_len=S, batch=B, hidden_dim=H)
    outputs, hidden = pl.pallas_call(
        kernel,
        out_shape=(jax.ShapeDtypeStruct((S, B, 2 * H), jnp.float32),
                   jax.ShapeDtypeStruct((B, H), jnp.float32)),
    )(gi, prep["whh"], prep["bhh"], prep["wfc"], prep["bfc"])
    return outputs, hidden


encoder_gru_forward_jit = jax.jit(encoder_gru_forward)


# ----------------------------------------------------------------------------
# Pure-JAX reference (for correctness check only; uses raw PyTorch-style params)
# ----------------------------------------------------------------------------
def _ref_gru_dir(x_seq, w_ih, w_hh, b_ih, b_hh):
    H = w_hh.shape[1]

    def step(h, x):
        gi = x @ w_ih.T + b_ih
        gh = h @ w_hh.T + b_hh
        r = jax.nn.sigmoid(gi[:, :H] + gh[:, :H])
        z = jax.nn.sigmoid(gi[:, H:2 * H] + gh[:, H:2 * H])
        n = jnp.tanh(gi[:, 2 * H:] + r * gh[:, 2 * H:])
        h_new = (1.0 - z) * n + z * h
        return h_new, h_new

    h0 = jnp.zeros((x_seq.shape[1], H), jnp.float32)
    hT, outs = jax.lax.scan(step, h0, x_seq)
    return outs, hT


def _ref_forward(params, src):
    embedded = jnp.take(params["embedding"], src, axis=0)
    out_f, h_f = _ref_gru_dir(embedded, params["w_ih_f"], params["w_hh_f"],
                              params["b_ih_f"], params["b_hh_f"])
    out_b_rev, h_b = _ref_gru_dir(embedded[::-1], params["w_ih_b"], params["w_hh_b"],
                                  params["b_ih_b"], params["b_hh_b"])
    outputs = jnp.concatenate([out_f, out_b_rev[::-1]], axis=-1)
    h_cat = jnp.concatenate([h_f, h_b], axis=-1)
    hidden = jnp.tanh(h_cat @ params["w_fc"].T + params["b_fc"])
    return outputs, hidden


# ----------------------------------------------------------------------------
# Parameter init + driver
# ----------------------------------------------------------------------------
def init_params(key, input_dim, emb_dim, hidden_dim):
    ks = jax.random.split(key, 12)
    k_gru = 1.0 / jnp.sqrt(hidden_dim)
    k_fc = 1.0 / jnp.sqrt(2.0 * hidden_dim)
    u = lambda k, shape, lim: jax.random.uniform(k, shape, jnp.float32, -lim, lim)
    return {
        "embedding": jax.random.normal(ks[0], (input_dim, emb_dim), jnp.float32),
        # forward direction
        "w_ih_f": u(ks[1], (3 * hidden_dim, emb_dim), k_gru),
        "w_hh_f": u(ks[2], (3 * hidden_dim, hidden_dim), k_gru),
        "b_ih_f": u(ks[3], (3 * hidden_dim,), k_gru),
        "b_hh_f": u(ks[4], (3 * hidden_dim,), k_gru),
        # backward direction
        "w_ih_b": u(ks[5], (3 * hidden_dim, emb_dim), k_gru),
        "w_hh_b": u(ks[6], (3 * hidden_dim, hidden_dim), k_gru),
        "b_ih_b": u(ks[7], (3 * hidden_dim,), k_gru),
        "b_hh_b": u(ks[8], (3 * hidden_dim,), k_gru),
        # fc: Linear(2H, H)
        "w_fc": u(ks[9], (hidden_dim, 2 * hidden_dim), k_fc),
        "b_fc": u(ks[10], (hidden_dim,), k_fc),
    }


if __name__ == "__main__":
    INPUT_DIM = 50    # vocab size
    EMB_DIM = 32
    HIDDEN_DIM = 32
    SEQ_LEN = 8
    BATCH = 8

    key = jax.random.PRNGKey(0)
    k_param, k_src = jax.random.split(key)
    params = init_params(k_param, INPUT_DIM, EMB_DIM, HIDDEN_DIM)
    src = jax.random.randint(k_src, (SEQ_LEN, BATCH), 0, INPUT_DIM, dtype=jnp.int32)

    # One-time parameter re-layout (outside the per-call path).
    prep = jax.tree_util.tree_map(jnp.asarray, prepare_encoder_params(params))

    outputs, hidden = encoder_gru_forward_jit(prep, src)
    outputs, hidden = jax.block_until_ready((outputs, hidden))

    # sanity check against pure-JAX reference
    ref_out, ref_hid = _ref_forward(params, src)
    assert outputs.shape == (SEQ_LEN, BATCH, 2 * HIDDEN_DIM)
    assert hidden.shape == (BATCH, HIDDEN_DIM)
    assert jnp.allclose(outputs, ref_out, atol=1e-4, rtol=1e-4)
    assert jnp.allclose(hidden, ref_hid, atol=1e-4, rtol=1e-4)

    print("KERNEL_OK")
</pallas_src>

<mosaic_0001>
module attributes {stable_mosaic.version = 11 : i64} {
  func.func @_encoder_kernel(%arg0: memref<64x192xf32, #tpu.memory_space<vmem>>, %arg1: memref<64x192xf32, #tpu.memory_space<vmem>>, %arg2: memref<1x192xf32, #tpu.memory_space<vmem>>, %arg3: memref<64x32xf32, #tpu.memory_space<vmem>>, %arg4: memref<1x32xf32, #tpu.memory_space<vmem>>, %arg5: memref<8x8x64xf32, #tpu.memory_space<vmem>>, %arg6: memref<8x32xf32, #tpu.memory_space<vmem>>) attributes {dimension_semantics = [], scalar_prefetch = 0 : i64, scratch_operands = 0 : i64, tpu.core_type = #tpu.core_type<tc>} {
    %c0 = arith.constant 0 : index
    %c0_0 = arith.constant 0 : index
    %0 = vector.load %arg2[%c0, %c0_0] : memref<1x192xf32, #tpu.memory_space<vmem>>, vector<1x192xf32>
    %1 = vector.shape_cast %0 : vector<1x192xf32> to vector<1x192xf32>
    %2 = vector.broadcast %1 : vector<1x192xf32> to vector<8x192xf32>
    %cst = arith.constant 0.000000e+00 : f32
    %3 = vector.broadcast %cst : f32 to vector<8x64xf32>
    %c0_1 = arith.constant 0 : index
    %c0_2 = arith.constant 0 : index
    %4 = vector.load %arg1[%c0_1, %c0_2] : memref<64x192xf32, #tpu.memory_space<vmem>>, vector<64x192xf32>
    %cst_3 = arith.constant dense<0.000000e+00> : vector<8x192xf32>
    %5 = tpu.matmul %3, %4, %cst_3 {dimension_numbers = #tpu.dot_dimension_numbers<[1], [0], [0], [1], [0, 0, 1, 1], [], []>} : vector<8x64xf32>, vector<64x192xf32>, vector<8x192xf32> -> vector<8x192xf32>
    %6 = arith.addf %5, %2 : vector<8x192xf32>
    %c0_4 = arith.constant 0 : index
    %c0_5 = arith.constant 0 : index
    %7 = vector.load %arg0[%c0_4, %c0_5] : memref<64x192xf32, #tpu.memory_space<vmem>>, vector<8x192xf32>
    %8 = vector.extract_strided_slice %7 {offsets = [0, 0], sizes = [8, 128], strides = [1, 1]} : vector<8x192xf32> to vector<8x128xf32>
    %9 = vector.extract_strided_slice %6 {offsets = [0, 0], sizes = [8, 128], strides = [1, 1]} : vector<8x192xf32> to vector<8x128xf32>
    %10 = arith.addf %8, %9 : vector<8x128xf32>
    %11 = arith.negf %10 : vector<8x128xf32>
    %12 = math.exp %11 : vector<8x128xf32>
    %cst_6 = arith.constant 1.000000e+00 : f32
    %13 = vector.broadcast %cst_6 : f32 to vector<8x128xf32>
    %14 = arith.addf %13, %12 : vector<8x128xf32>
    %15 = arith.divf %13, %14 : vector<8x128xf32>
    %16 = vector.extract_strided_slice %15 {offsets = [0, 0], sizes = [8, 64], strides = [1, 1]} : vector<8x128xf32> to vector<8x64xf32>
    %17 = vector.extract_strided_slice %15 {offsets = [0, 64], sizes = [8, 64], strides = [1, 1]} : vector<8x128xf32> to vector<8x64xf32>
    %18 = vector.extract_strided_slice %7 {offsets = [0, 128], sizes = [8, 64], strides = [1, 1]} : vector<8x192xf32> to vector<8x64xf32>
    %19 = vector.extract_strided_slice %6 {offsets = [0, 128], sizes = [8, 64], strides = [1, 1]} : vector<8x192xf32> to vector<8x64xf32>
    %20 = arith.mulf %16, %19 : vector<8x64xf32>
    %21 = arith.addf %18, %20 : vector<8x64xf32>
    %22 = math.tanh %21 : vector<8x64xf32>
    %cst_7 = arith.constant 1.000000e+00 : f32
    %23 = vector.broadcast %cst_7 : f32 to vector<8x64xf32>
    %24 = arith.subf %23, %17 : vector<8x64xf32>
    %25 = arith.mulf %24, %22 : vector<8x64xf32>
    %26 = arith.mulf %17, %3 : vector<8x64xf32>
    %27 = arith.addf %25, %26 : vector<8x64xf32>
    %28 = vector.extract_strided_slice %27 {offsets = [0, 0], sizes = [8, 32], strides = [1, 1]} : vector<8x64xf32> to vector<8x32xf32>
    %c0_8 = arith.constant 0 : index
    %c0_9 = arith.constant 0 : index
    %c0_10 = arith.constant 0 : index
    %29 = vector.load %arg5[%c0_8, %c0_9, %c0_10] : memref<8x8x64xf32, #tpu.memory_space<vmem>>, vector<1x8x32xf32>
    %30 = vector.shape_cast %29 : vector<1x8x32xf32> to vector<8x32xf32>
    %31 = vector.shape_cast %28 : vector<8x32xf32> to vector<1x8x32xf32>
    tpu.vector_store %arg5[%c0_8, %c0_9, %c0_10], %31 {strides = array<i32>} : memref<8x8x64xf32, #tpu.memory_space<vmem>>, vector<1x8x32xf32>,
    %32 = vector.extract_strided_slice %27 {offsets = [0, 32], sizes = [8, 32], strides = [1, 1]} : vector<8x64xf32> to vector<8x32xf32>
    %c7 = arith.constant 7 : index
    %c0_11 = arith.constant 0 : index
    %c32 = arith.constant 32 : index
    %33 = vector.load %arg5[%c7, %c0_11, %c32] : memref<8x8x64xf32, #tpu.memory_space<vmem>>, vector<1x8x32xf32>
    %34 = vector.shape_cast %33 : vector<1x8x32xf32> to vector<8x32xf32>
    %35 = vector.shape_cast %32 : vector<8x32xf32> to vector<1x8x32xf32>
    tpu.vector_store %arg5[%c7, %c0_11, %c32], %35 {strides = array<i32>} : memref<8x8x64xf32, #tpu.memory_space<vmem>>, vector<1x8x32xf32>,
    %c0_12 = arith.constant 0 : index
    %c0_13 = arith.constant 0 : index
    %36 = vector.load %arg1[%c0_12, %c0_13] : memref<64x192xf32, #tpu.memory_space<vmem>>, vector<64x192xf32>
    %cst_14 = arith.constant dense<0.000000e+00> : vector<8x192xf32>
    %37 = tpu.matmul %27, %36, %cst_14 {dimension_numbers = #tpu.dot_dimension_numbers<[1], [0], [0], [1], [0, 0, 1, 1], [], []>} : vector<8x64xf32>, vector<64x192xf32>, vector<8x192xf32> -> vector<8x192xf32>
    %38 = arith.addf %37, %2 : vector<8x192xf32>
    %c8 = arith.constant 8 : index
    %c0_15 = arith.constant 0 : index
    %39 = vector.load %arg0[%c8, %c0_15] : memref<64x192xf32, #tpu.memory_space<vmem>>, vector<8x192xf32>
    %40 = vector.extract_strided_slice %39 {offsets = [0, 0], sizes = [8, 128], strides = [1, 1]} : vector<8x192xf32> to vector<8x128xf32>
    %41 = vector.extract_strided_slice %38 {offsets = [0, 0], sizes = [8, 128], strides = [1, 1]} : vector<8x192xf32> to vector<8x128xf32>
    %42 = arith.addf %40, %41 : vector<8x128xf32>
    %43 = arith.negf %42 : vector<8x128xf32>
    %44 = math.exp %43 : vector<8x128xf32>
    %cst_16 = arith.constant 1.000000e+00 : f32
    %45 = vector.broadcast %cst_16 : f32 to vector<8x128xf32>
    %46 = arith.addf %45, %44 : vector<8x128xf32>
    %47 = arith.divf %45, %46 : vector<8x128xf32>
    %48 = vector.extract_strided_slice %47 {offsets = [0, 0], sizes = [8, 64], strides = [1, 1]} : vector<8x128xf32> to vector<8x64xf32>
    %49 = vector.extract_strided_slice %47 {offsets = [0, 64], sizes = [8, 64], strides = [1, 1]} : vector<8x128xf32> to vector<8x64xf32>
    %50 = vector.extract_strided_slice %39 {offsets = [0, 128], sizes = [8, 64], strides = [1, 1]} : vector<8x192xf32> to vector<8x64xf32>
    %51 = vector.extract_strided_slice %38 {offsets = [0, 128], sizes = [8, 64], strides = [1, 1]} : vector<8x192xf32> to vector<8x64xf32>
    %52 = arith.mulf %48, %51 : vector<8x64xf32>
    %53 = arith.addf %50, %52 : vector<8x64xf32>
    %54 = math.tanh %53 : vector<8x64xf32>
    %cst_17 = arith.constant 1.000000e+00 : f32
    %55 = vector.broadcast %cst_17 : f32 to vector<8x64xf32>
    %56 = arith.subf %55, %49 : vector<8x64xf32>
    %57 = arith.mulf %56, %54 : vector<8x64xf32>
    %58 = arith.mulf %49, %27 : vector<8x64xf32>
    %59 = arith.addf %57, %58 : vector<8x64xf32>
    %60 = vector.extract_strided_slice %59 {offsets = [0, 0], sizes = [8, 32], strides = [1, 1]} : vector<8x64xf32> to vector<8x32xf32>
    %c1 = arith.constant 1 : index
    %c0_18 = arith.constant 0 : index
    %c0_19 = arith.constant 0 : index
    %61 = vector.load %arg5[%c1, %c0_18, %c0_19] : memref<8x8x64xf32, #tpu.memory_space<vmem>>, vector<1x8x32xf32>
    %62 = vector.shape_cast %61 : vector<1x8x32xf32> to vector<8x32xf32>
    %63 = vector.shape_cast %60 : vector<8x32xf32> to vector<1x8x32xf32>
    tpu.vector_store %arg5[%c1, %c0_18, %c0_19], %63 {strides = array<i32>} : memref<8x8x64xf32, #tpu.memory_space<vmem>>, vector<1x8x32xf32>,
    %64 = vector.extract_strided_slice %59 {offsets = [0, 32], sizes = [8, 32], strides = [1, 1]} : vector<8x64xf32> to vector<8x32xf32>
    %c6 = arith.constant 6 : index
    %c0_20 = arith.constant 0 : index
    %c32_21 = arith.constant 32 : index
    %65 = vector.load %arg5[%c6, %c0_20, %c32_21] : memref<8x8x64xf32, #tpu.memory_space<vmem>>, vector<1x8x32xf32>
    %66 = vector.shape_cast %65 : vector<1x8x32xf32> to vector<8x32xf32>
    %67 = vector.shape_cast %64 : vector<8x32xf32> to vector<1x8x32xf32>
    tpu.vector_store %arg5[%c6, %c0_20, %c32_21], %67 {strides = array<i32>} : memref<8x8x64xf32, #tpu.memory_space<vmem>>, vector<1x8x32xf32>,
    %c0_22 = arith.constant 0 : index
    %c0_23 = arith.constant 0 : index
    %68 = vector.load %arg1[%c0_22, %c0_23] : memref<64x192xf32, #tpu.memory_space<vmem>>, vector<64x192xf32>
    %cst_24 = arith.constant dense<0.000000e+00> : vector<8x192xf32>
    %69 = tpu.matmul %59, %68, %cst_24 {dimension_numbers = #tpu.dot_dimension_numbers<[1], [0], [0], [1], [0, 0, 1, 1], [], []>} : vector<8x64xf32>, vector<64x192xf32>, vector<8x192xf32> -> vector<8x192xf32>
    %70 = arith.addf %69, %2 : vector<8x192xf32>
    %c16 = arith.constant 16 : index
    %c0_25 = arith.constant 0 : index
    %71 = vector.load %arg0[%c16, %c0_25] : memref<64x192xf32, #tpu.memory_space<vmem>>, vector<8x192xf32>
    %72 = vector.extract_strided_slice %71 {offsets = [0, 0], sizes = [8, 128], strides = [1, 1]} : vector<8x192xf32> to vector<8x128xf32>
    %73 = vector.extract_strided_slice %70 {offsets = [0, 0], sizes = [8, 128], strides = [1, 1]} : vector<8x192xf32> to vector<8x128xf32>
    %74 = arith.addf %72, %73 : vector<8x128xf32>
    %75 = arith.negf %74 : vector<8x128xf32>
    %76 = math.exp %75 : vector<8x128xf32>
    %cst_26 = arith.constant 1.000000e+00 : f32
    %77 = vector.broadcast %cst_26 : f32 to vector<8x128xf32>
    %78 = arith.addf %77, %76 : vector<8x128xf32>
    %79 = arith.divf %77, %78 : vector<8x128xf32>
    %80 = vector.extract_strided_slice %79 {offsets = [0, 0], sizes = [8, 64], strides = [1, 1]} : vector<8x128xf32> to vector<8x64xf32>
    %81 = vector.extract_strided_slice %79 {offsets = [0, 64], sizes = [8, 64], strides = [1, 1]} : vector<8x128xf32> to vector<8x64xf32>
    %82 = vector.extract_strided_slice %71 {offsets = [0, 128], sizes = [8, 64], strides = [1, 1]} : vector<8x192xf32> to vector<8x64xf32>
    %83 = vector.extract_strided_slice %70 {offsets = [0, 128], sizes = [8, 64], strides = [1, 1]} : vector<8x192xf32> to vector<8x64xf32>
    %84 = arith.mulf %80, %83 : vector<8x64xf32>
    %85 = arith.addf %82, %84 : vector<8x64xf32>
    %86 = math.tanh %85 : vector<8x64xf32>
    %cst_27 = arith.constant 1.000000e+00 : f32
    %87 = vector.broadcast %cst_27 : f32 to vector<8x64xf32>
    %88 = arith.subf %87, %81 : vector<8x64xf32>
    %89 = arith.mulf %88, %86 : vector<8x64xf32>
    %90 = arith.mulf %81, %59 : vector<8x64xf32>
    %91 = arith.addf %89, %90 : vector<8x64xf32>
    %92 = vector.extract_strided_slice %91 {offsets = [0, 0], sizes = [8, 32], strides = [1, 1]} : vector<8x64xf32> to vector<8x32xf32>
    %c2 = arith.constant 2 : index
    %c0_28 = arith.constant 0 : index
    %c0_29 = arith.constant 0 : index
    %93 = vector.load %arg5[%c2, %c0_28, %c0_29] : memref<8x8x64xf32, #tpu.memory_space<vmem>>, vector<1x8x32xf32>
    %94 = vector.shape_cast %93 : vector<1x8x32xf32> to vector<8x32xf32>
    %95 = vector.shape_cast %92 : vector<8x32xf32> to vector<1x8x32xf32>
    tpu.vector_store %arg5[%c2, %c0_28, %c0_29], %95 {strides = array<i32>} : memref<8x8x64xf32, #tpu.memory_space<vmem>>, vector<1x8x32xf32>,
    %96 = vector.extract_strided_slice %91 {offsets = [0, 32], sizes = [8, 32], strides = [1, 1]} : vector<8x64xf32> to vector<8x32xf32>
    %c5 = arith.constant 5 : index
    %c0_30 = arith.constant 0 : index
    %c32_31 = arith.constant 32 : index
    %97 = vector.load %arg5[%c5, %c0_30, %c32_31] : memref<8x8x64xf32, #tpu.memory_space<vmem>>, vector<1x8x32xf32>
    %98 = vector.shape_cast %97 : vector<1x8x32xf32> to vector<8x32xf32>
    %99 = vector.shape_cast %96 : vector<8x32xf32> to vector<1x8x32xf32>
    tpu.vector_store %arg5[%c5, %c0_30, %c32_31], %99 {strides = array<i32>} : memref<8x8x64xf32, #tpu.memory_space<vmem>>, vector<1x8x32xf32>,
    %c0_32 = arith.constant 0 : index
    %c0_33 = arith.constant 0 : index
    %100 = vector.load %arg1[%c0_32, %c0_33] : memref<64x192xf32, #tpu.memory_space<vmem>>, vector<64x192xf32>
    %cst_34 = arith.constant dense<0.000000e+00> : vector<8x192xf32>
    %101 = tpu.matmul %91, %100, %cst_34 {dimension_numbers = #tpu.dot_dimension_numbers<[1], [0], [0], [1], [0, 0, 1, 1], [], []>} : vector<8x64xf32>, vector<64x192xf32>, vector<8x192xf32> -> vector<8x192xf32>
    %102 = arith.addf %101, %2 : vector<8x192xf32>
    %c24 = arith.constant 24 : index
    %c0_35 = arith.constant 0 : index
    %103 = vector.load %arg0[%c24, %c0_35] : memref<64x192xf32, #tpu.memory_space<vmem>>, vector<8x192xf32>
    %104 = vector.extract_strided_slice %103 {offsets = [0, 0], sizes = [8, 128], strides = [1, 1]} : vector<8x192xf32> to vector<8x128xf32>
    %105 = vector.extract_strided_slice %102 {offsets = [0, 0], sizes = [8, 128], strides = [1, 1]} : vector<8x192xf32> to vector<8x128xf32>
    %106 = arith.addf %104, %105 : vector<8x128xf32>
    %107 = arith.negf %106 : vector<8x128xf32>
    %108 = math.exp %107 : vector<8x128xf32>
    %cst_36 = arith.constant 1.000000e+00 : f32
    %109 = vector.broadcast %cst_36 : f32 to vector<8x128xf32>
    %110 = arith.addf %109, %108 : vector<8x128xf32>
    %111 = arith.divf %109, %110 : vector<8x128xf32>
    %112 = vector.extract_strided_slice %111 {offsets = [0, 0], sizes = [8, 64], strides = [1, 1]} : vector<8x128xf32> to vector<8x64xf32>
    %113 = vector.extract_strided_slice %111 {offsets = [0, 64], sizes = [8, 64], strides = [1, 1]} : vector<8x128xf32> to vector<8x64xf32>
    %114 = vector.extract_strided_slice %103 {offsets = [0, 128], sizes = [8, 64], strides = [1, 1]} : vector<8x192xf32> to vector<8x64xf32>
    %115 = vector.extract_strided_slice %102 {offsets = [0, 128], sizes = [8, 64], strides = [1, 1]} : vector<8x192xf32> to vector<8x64xf32>
    %116 = arith.mulf %112, %115 : vector<8x64xf32>
    %117 = arith.addf %114, %116 : vector<8x64xf32>
    %118 = math.tanh %117 : vector<8x64xf32>
    %cst_37 = arith.constant 1.000000e+00 : f32
    %119 = vector.broadcast %cst_37 : f32 to vector<8x64xf32>
    %120 = arith.subf %119, %113 : vector<8x64xf32>
    %121 = arith.mulf %120, %118 : vector<8x64xf32>
    %122 = arith.mulf %113, %91 : vector<8x64xf32>
    %123 = arith.addf %121, %122 : vector<8x64xf32>
    %124 = vector.extract_strided_slice %123 {offsets = [0, 0], sizes = [8, 32], strides = [1, 1]} : vector<8x64xf32> to vector<8x32xf32>
    %c3 = arith.constant 3 : index
    %c0_38 = arith.constant 0 : index
    %c0_39 = arith.constant 0 : index
    %125 = vector.load %arg5[%c3, %c0_38, %c0_39] : memref<8x8x64xf32, #tpu.memory_space<vmem>>, vector<1x8x32xf32>
    %126 = vector.shape_cast %125 : vector<1x8x32xf32> to vector<8x32xf32>
    %127 = vector.shape_cast %124 : vector<8x32xf32> to vector<1x8x32xf32>
    tpu.vector_store %arg5[%c3, %c0_38, %c0_39], %127 {strides = array<i32>} : memref<8x8x64xf32, #tpu.memory_space<vmem>>, vector<1x8x32xf32>,
    %128 = vector.extract_strided_slice %123 {offsets = [0, 32], sizes = [8, 32], strides = [1, 1]} : vector<8x64xf32> to vector<8x32xf32>
    %c4 = arith.constant 4 : index
    %c0_40 = arith.constant 0 : index
    %c32_41 = arith.constant 32 : index
    %129 = vector.load %arg5[%c4, %c0_40, %c32_41] : memref<8x8x64xf32, #tpu.memory_space<vmem>>, vector<1x8x32xf32>
    %130 = vector.shape_cast %129 : vector<1x8x32xf32> to vector<8x32xf32>
    %131 = vector.shape_cast %128 : vector<8x32xf32> to vector<1x8x32xf32>
    tpu.vector_store %arg5[%c4, %c0_40, %c32_41], %131 {strides = array<i32>} : memref<8x8x64xf32, #tpu.memory_space<vmem>>, vector<1x8x32xf32>,
    %c0_42 = arith.constant 0 : index
    %c0_43 = arith.constant 0 : index
    %132 = vector.load %arg1[%c0_42, %c0_43] : memref<64x192xf32, #tpu.memory_space<vmem>>, vector<64x192xf32>
    %cst_44 = arith.constant dense<0.000000e+00> : vector<8x192xf32>
    %133 = tpu.matmul %123, %132, %cst_44 {dimension_numbers = #tpu.dot_dimension_numbers<[1], [0], [0], [1], [0, 0, 1, 1], [], []>} : vector<8x64xf32>, vector<64x192xf32>, vector<8x192xf32> -> vector<8x192xf32>
    %134 = arith.addf %133, %2 : vector<8x192xf32>
    %c32_45 = arith.constant 32 : index
    %c0_46 = arith.constant 0 : index
    %135 = vector.load %arg0[%c32_45, %c0_46] : memref<64x192xf32, #tpu.memory_space<vmem>>, vector<8x192xf32>
    %136 = vector.extract_strided_slice %135 {offsets = [0, 0], sizes = [8, 128], strides = [1, 1]} : vector<8x192xf32> to vector<8x128xf32>
    %137 = vector.extract_strided_slice %134 {offsets = [0, 0], sizes = [8, 128], strides = [1, 1]} : vector<8x192xf32> to vector<8x128xf32>
    %138 = arith.addf %136, %137 : vector<8x128xf32>
    %139 = arith.negf %138 : vector<8x128xf32>
    %140 = math.exp %139 : vector<8x128xf32>
    %cst_47 = arith.constant 1.000000e+00 : f32
    %141 = vector.broadcast %cst_47 : f32 to vector<8x128xf32>
    %142 = arith.addf %141, %140 : vector<8x128xf32>
    %143 = arith.divf %141, %142 : vector<8x128xf32>
    %144 = vector.extract_strided_slice %143 {offsets = [0, 0], sizes = [8, 64], strides = [1, 1]} : vector<8x128xf32> to vector<8x64xf32>
    %145 = vector.extract_strided_slice %143 {offsets = [0, 64], sizes = [8, 64], strides = [1, 1]} : vector<8x128xf32> to vector<8x64xf32>
    %146 = vector.extract_strided_slice %135 {offsets = [0, 128], sizes = [8, 64], strides = [1, 1]} : vector<8x192xf32> to vector<8x64xf32>
    %147 = vector.extract_strided_slice %134 {offsets = [0, 128], sizes = [8, 64], strides = [1, 1]} : vector<8x192xf32> to vector<8x64xf32>
    %148 = arith.mulf %144, %147 : vector<8x64xf32>
    %149 = arith.addf %146, %148 : vector<8x64xf32>
    %150 = math.tanh %149 : vector<8x64xf32>
    %cst_48 = arith.constant 1.000000e+00 : f32
    %151 = vector.broadcast %cst_48 : f32 to vector<8x64xf32>
    %152 = arith.subf %151, %145 : vector<8x64xf32>
    %153 = arith.mulf %152, %150 : vector<8x64xf32>
    %154 = arith.mulf %145, %123 : vector<8x64xf32>
    %155 = arith.addf %153, %154 : vector<8x64xf32>
    %156 = vector.extract_strided_slice %155 {offsets = [0, 0], sizes = [8, 32], strides = [1, 1]} : vector<8x64xf32> to vector<8x32xf32>
    %c4_49 = arith.constant 4 : index
    %c0_50 = arith.constant 0 : index
    %c0_51 = arith.constant 0 : index
    %157 = vector.load %arg5[%c4_49, %c0_50, %c0_51] : memref<8x8x64xf32, #tpu.memory_space<vmem>>, vector<1x8x32xf32>
    %158 = vector.shape_cast %157 : vector<1x8x32xf32> to vector<8x32xf32>
    %159 = vector.shape_cast %156 : vector<8x32xf32> to vector<1x8x32xf32>
    tpu.vector_store %arg5[%c4_49, %c0_50, %c0_51], %159 {strides = array<i32>} : memref<8x8x64xf32, #tpu.memory_space<vmem>>, vector<1x8x32xf32>,
    %160 = vector.extract_strided_slice %155 {offsets = [0, 32], sizes = [8, 32], strides = [1, 1]} : vector<8x64xf32> to vector<8x32xf32>
    %c3_52 = arith.constant 3 : index
    %c0_53 = arith.constant 0 : index
    %c32_54 = arith.constant 32 : index
    %161 = vector.load %arg5[%c3_52, %c0_53, %c32_54] : memref<8x8x64xf32, #tpu.memory_space<vmem>>, vector<1x8x32xf32>
    %162 = vector.shape_cast %161 : vector<1x8x32xf32> to vector<8x32xf32>
    %163 = vector.shape_cast %160 : vector<8x32xf32> to vector<1x8x32xf32>
    tpu.vector_store %arg5[%c3_52, %c0_53, %c32_54], %163 {strides = array<i32>} : memref<8x8x64xf32, #tpu.memory_space<vmem>>, vector<1x8x32xf32>,
    %c0_55 = arith.constant 0 : index
    %c0_56 = arith.constant 0 : index
    %164 = vector.load %arg1[%c0_55, %c0_56] : memref<64x192xf32, #tpu.memory_space<vmem>>, vector<64x192xf32>
    %cst_57 = arith.constant dense<0.000000e+00> : vector<8x192xf32>
    %165 = tpu.matmul %155, %164, %cst_57 {dimension_numbers = #tpu.dot_dimension_numbers<[1], [0], [0], [1], [0, 0, 1, 1], [], []>} : vector<8x64xf32>, vector<64x192xf32>, vector<8x192xf32> -> vector<8x192xf32>
    %166 = arith.addf %165, %2 : vector<8x192xf32>
    %c40 = arith.constant 40 : index
    %c0_58 = arith.constant 0 : index
    %167 = vector.load %arg0[%c40, %c0_58] : memref<64x192xf32, #tpu.memory_space<vmem>>, vector<8x192xf32>
    %168 = vector.extract_strided_slice %167 {offsets = [0, 0], sizes = [8, 128], strides = [1, 1]} : vector<8x192xf32> to vector<8x128xf32>
    %169 = vector.extract_strided_slice %166 {offsets = [0, 0], sizes = [8, 128], strides = [1, 1]} : vector<8x192xf32> to vector<8x128xf32>
    %170 = arith.addf %168, %169 : vector<8x128xf32>
    %171 = arith.negf %170 : vector<8x128xf32>
    %172 = math.exp %171 : vector<8x128xf32>
    %cst_59 = arith.constant 1.000000e+00 : f32
    %173 = vector.broadcast %cst_59 : f32 to vector<8x128xf32>
    %174 = arith.addf %173, %172 : vector<8x128xf32>
    %175 = arith.divf %173, %174 : vector<8x128xf32>
    %176 = vector.extract_strided_slice %175 {offsets = [0, 0], sizes = [8, 64], strides = [1, 1]} : vector<8x128xf32> to vector<8x64xf32>
    %177 = vector.extract_strided_slice %175 {offsets = [0, 64], sizes = [8, 64], strides = [1, 1]} : vector<8x128xf32> to vector<8x64xf32>
    %178 = vector.extract_strided_slice %167 {offsets = [0, 128], sizes = [8, 64], strides = [1, 1]} : vector<8x192xf32> to vector<8x64xf32>
    %179 = vector.extract_strided_slice %166 {offsets = [0, 128], sizes = [8, 64], strides = [1, 1]} : vector<8x192xf32> to vector<8x64xf32>
    %180 = arith.mulf %176, %179 : vector<8x64xf32>
    %181 = arith.addf %178, %180 : vector<8x64xf32>
    %182 = math.tanh %181 : vector<8x64xf32>
    %cst_60 = arith.constant 1.000000e+00 : f32
    %183 = vector.broadcast %cst_60 : f32 to vector<8x64xf32>
    %184 = arith.subf %183, %177 : vector<8x64xf32>
    %185 = arith.mulf %184, %182 : vector<8x64xf32>
    %186 = arith.mulf %177, %155 : vector<8x64xf32>
    %187 = arith.addf %185, %186 : vector<8x64xf32>
    %188 = vector.extract_strided_slice %187 {offsets = [0, 0], sizes = [8, 32], strides = [1, 1]} : vector<8x64xf32> to vector<8x32xf32>
    %c5_61 = arith.constant 5 : index
    %c0_62 = arith.constant 0 : index
    %c0_63 = arith.constant 0 : index
    %189 = vector.load %arg5[%c5_61, %c0_62, %c0_63] : memref<8x8x64xf32, #tpu.memory_space<vmem>>, vector<1x8x32xf32>
    %190 = vector.shape_cast %189 : vector<1x8x32xf32> to vector<8x32xf32>
    %191 = vector.shape_cast %188 : vector<8x32xf32> to vector<1x8x32xf32>
    tpu.vector_store %arg5[%c5_61, %c0_62, %c0_63], %191 {strides = array<i32>} : memref<8x8x64xf32, #tpu.memory_space<vmem>>, vector<1x8x32xf32>,
    %192 = vector.extract_strided_slice %187 {offsets = [0, 32], sizes = [8, 32], strides = [1, 1]} : vector<8x64xf32> to vector<8x32xf32>
    %c2_64 = arith.constant 2 : index
    %c0_65 = arith.constant 0 : index
    %c32_66 = arith.constant 32 : index
    %193 = vector.load %arg5[%c2_64, %c0_65, %c32_66] : memref<8x8x64xf32, #tpu.memory_space<vmem>>, vector<1x8x32xf32>
    %194 = vector.shape_cast %193 : vector<1x8x32xf32> to vector<8x32xf32>
    %195 = vector.shape_cast %192 : vector<8x32xf32> to vector<1x8x32xf32>
    tpu.vector_store %arg5[%c2_64, %c0_65, %c32_66], %195 {strides = array<i32>} : memref<8x8x64xf32, #tpu.memory_space<vmem>>, vector<1x8x32xf32>,
    %c0_67 = arith.constant 0 : index
    %c0_68 = arith.constant 0 : index
    %196 = vector.load %arg1[%c0_67, %c0_68] : memref<64x192xf32, #tpu.memory_space<vmem>>, vector<64x192xf32>
    %cst_69 = arith.constant dense<0.000000e+00> : vector<8x192xf32>
    %197 = tpu.matmul %187, %196, %cst_69 {dimension_numbers = #tpu.dot_dimension_numbers<[1], [0], [0], [1], [0, 0, 1, 1], [], []>} : vector<8x64xf32>, vector<64x192xf32>, vector<8x192xf32> -> vector<8x192xf32>
    %198 = arith.addf %197, %2 : vector<8x192xf32>
    %c48 = arith.constant 48 : index
    %c0_70 = arith.constant 0 : index
    %199 = vector.load %arg0[%c48, %c0_70] : memref<64x192xf32, #tpu.memory_space<vmem>>, vector<8x192xf32>
    %200 = vector.extract_strided_slice %199 {offsets = [0, 0], sizes = [8, 128], strides = [1, 1]} : vector<8x192xf32> to vector<8x128xf32>
    %201 = vector.extract_strided_slice %198 {offsets = [0, 0], sizes = [8, 128], strides = [1, 1]} : vector<8x192xf32> to vector<8x128xf32>
    %202 = arith.addf %200, %201 : vector<8x128xf32>
    %203 = arith.negf %202 : vector<8x128xf32>
    %204 = math.exp %203 : vector<8x128xf32>
    %cst_71 = arith.constant 1.000000e+00 : f32
    %205 = vector.broadcast %cst_71 : f32 to vector<8x128xf32>
    %206 = arith.addf %205, %204 : vector<8x128xf32>
    %207 = arith.divf %205, %206 : vector<8x128xf32>
    %208 = vector.extract_strided_slice %207 {offsets = [0, 0], sizes = [8, 64], strides = [1, 1]} : vector<8x128xf32> to vector<8x64xf32>
    %209 = vector.extract_strided_slice %207 {offsets = [0, 64], sizes = [8, 64], strides = [1, 1]} : vector<8x128xf32> to vector<8x64xf32>
    %210 = vector.extract_strided_slice %199 {offsets = [0, 128], sizes = [8, 64], strides = [1, 1]} : vector<8x192xf32> to vector<8x64xf32>
    %211 = vector.extract_strided_slice %198 {offsets = [0, 128], sizes = [8, 64], strides = [1, 1]} : vector<8x192xf32> to vector<8x64xf32>
    %212 = arith.mulf %208, %211 : vector<8x64xf32>
    %213 = arith.addf %210, %212 : vector<8x64xf32>
    %214 = math.tanh %213 : vector<8x64xf32>
    %cst_72 = arith.constant 1.000000e+00 : f32
    %215 = vector.broadcast %cst_72 : f32 to vector<8x64xf32>
    %216 = arith.subf %215, %209 : vector<8x64xf32>
    %217 = arith.mulf %216, %214 : vector<8x64xf32>
    %218 = arith.mulf %209, %187 : vector<8x64xf32>
    %219 = arith.addf %217, %218 : vector<8x64xf32>
    %220 = vector.extract_strided_slice %219 {offsets = [0, 0], sizes = [8, 32], strides = [1, 1]} : vector<8x64xf32> to vector<8x32xf32>
    %c6_73 = arith.constant 6 : index
    %c0_74 = arith.constant 0 : index
    %c0_75 = arith.constant 0 : index
    %221 = vector.load %arg5[%c6_73, %c0_74, %c0_75] : memref<8x8x64xf32, #tpu.memory_space<vmem>>, vector<1x8x32xf32>
    %222 = vector.shape_cast %221 : vector<1x8x32xf32> to vector<8x32xf32>
    %223 = vector.shape_cast %220 : vector<8x32xf32> to vector<1x8x32xf32>
    tpu.vector_store %arg5[%c6_73, %c0_74, %c0_75], %223 {strides = array<i32>} : memref<8x8x64xf32, #tpu.memory_space<vmem>>, vector<1x8x32xf32>,
    %224 = vector.extract_strided_slice %219 {offsets = [0, 32], sizes = [8, 32], strides = [1, 1]} : vector<8x64xf32> to vector<8x32xf32>
    %c1_76 = arith.constant 1 : index
    %c0_77 = arith.constant 0 : index
    %c32_78 = arith.constant 32 : index
    %225 = vector.load %arg5[%c1_76, %c0_77, %c32_78] : memref<8x8x64xf32, #tpu.memory_space<vmem>>, vector<1x8x32xf32>
    %226 = vector.shape_cast %225 : vector<1x8x32xf32> to vector<8x32xf32>
    %227 = vector.shape_cast %224 : vector<8x32xf32> to vector<1x8x32xf32>
    tpu.vector_store %arg5[%c1_76, %c0_77, %c32_78], %227 {strides = array<i32>} : memref<8x8x64xf32, #tpu.memory_space<vmem>>, vector<1x8x32xf32>,
    %c0_79 = arith.constant 0 : index
    %c0_80 = arith.constant 0 : index
    %228 = vector.load %arg1[%c0_79, %c0_80] : memref<64x192xf32, #tpu.memory_space<vmem>>, vector<64x192xf32>
    %cst_81 = arith.constant dense<0.000000e+00> : vector<8x192xf32>
    %229 = tpu.matmul %219, %228, %cst_81 {dimension_numbers = #tpu.dot_dimension_numbers<[1], [0], [0], [1], [0, 0, 1, 1], [], []>} : vector<8x64xf32>, vector<64x192xf32>, vector<8x192xf32> -> vector<8x192xf32>
    %230 = arith.addf %229, %2 : vector<8x192xf32>
    %c56 = arith.constant 56 : index
    %c0_82 = arith.constant 0 : index
    %231 = vector.load %arg0[%c56, %c0_82] : memref<64x192xf32, #tpu.memory_space<vmem>>, vector<8x192xf32>
    %232 = vector.extract_strided_slice %231 {offsets = [0, 0], sizes = [8, 128], strides = [1, 1]} : vector<8x192xf32> to vector<8x128xf32>
    %233 = vector.extract_strided_slice %230 {offsets = [0, 0], sizes = [8, 128], strides = [1, 1]} : vector<8x192xf32> to vector<8x128xf32>
    %234 = arith.addf %232, %233 : vector<8x128xf32>
    %235 = arith.negf %234 : vector<8x128xf32>
    %236 = math.exp %235 : vector<8x128xf32>
    %cst_83 = arith.constant 1.000000e+00 : f32
    %237 = vector.broadcast %cst_83 : f32 to vector<8x128xf32>
    %238 = arith.addf %237, %236 : vector<8x128xf32>
    %239 = arith.divf %237, %238 : vector<8x128xf32>
    %240 = vector.extract_strided_slice %239 {offsets = [0, 0], sizes = [8, 64], strides = [1, 1]} : vector<8x128xf32> to vector<8x64xf32>
    %241 = vector.extract_strided_slice %239 {offsets = [0, 64], sizes = [8, 64], strides = [1, 1]} : vector<8x128xf32> to vector<8x64xf32>
    %242 = vector.extract_strided_slice %231 {offsets = [0, 128], sizes = [8, 64], strides = [1, 1]} : vector<8x192xf32> to vector<8x64xf32>
    %243 = vector.extract_strided_slice %230 {offsets = [0, 128], sizes = [8, 64], strides = [1, 1]} : vector<8x192xf32> to vector<8x64xf32>
    %244 = arith.mulf %240, %243 : vector<8x64xf32>
    %245 = arith.addf %242, %244 : vector<8x64xf32>
    %246 = math.tanh %245 : vector<8x64xf32>
    %cst_84 = arith.constant 1.000000e+00 : f32
    %247 = vector.broadcast %cst_84 : f32 to vector<8x64xf32>
    %248 = arith.subf %247, %241 : vector<8x64xf32>
    %249 = arith.mulf %248, %246 : vector<8x64xf32>
    %250 = arith.mulf %241, %219 : vector<8x64xf32>
    %251 = arith.addf %249, %250 : vector<8x64xf32>
    %252 = vector.extract_strided_slice %251 {offsets = [0, 0], sizes = [8, 32], strides = [1, 1]} : vector<8x64xf32> to vector<8x32xf32>
    %c7_85 = arith.constant 7 : index
    %c0_86 = arith.constant 0 : index
    %c0_87 = arith.constant 0 : index
    %253 = vector.load %arg5[%c7_85, %c0_86, %c0_87] : memref<8x8x64xf32, #tpu.memory_space<vmem>>, vector<1x8x32xf32>
    %254 = vector.shape_cast %253 : vector<1x8x32xf32> to vector<8x32xf32>
    %255 = vector.shape_cast %252 : vector<8x32xf32> to vector<1x8x32xf32>
    tpu.vector_store %arg5[%c7_85, %c0_86, %c0_87], %255 {strides = array<i32>} : memref<8x8x64xf32, #tpu.memory_space<vmem>>, vector<1x8x32xf32>,
    %256 = vector.extract_strided_slice %251 {offsets = [0, 32], sizes = [8, 32], strides = [1, 1]} : vector<8x64xf32> to vector<8x32xf32>
    %c0_88 = arith.constant 0 : index
    %c0_89 = arith.constant 0 : index
    %c32_90 = arith.constant 32 : index
    %257 = vector.load %arg5[%c0_88, %c0_89, %c32_90] : memref<8x8x64xf32, #tpu.memory_space<vmem>>, vector<1x8x32xf32>
    %258 = vector.shape_cast %257 : vector<1x8x32xf32> to vector<8x32xf32>
    %259 = vector.shape_cast %256 : vector<8x32xf32> to vector<1x8x32xf32>
    tpu.vector_store %arg5[%c0_88, %c0_89, %c32_90], %259 {strides = array<i32>} : memref<8x8x64xf32, #tpu.memory_space<vmem>>, vector<1x8x32xf32>,
    %c0_91 = arith.constant 0 : index
    %c0_92 = arith.constant 0 : index
    %260 = vector.load %arg3[%c0_91, %c0_92] : memref<64x32xf32, #tpu.memory_space<vmem>>, vector<64x32xf32>
    %cst_93 = arith.constant dense<0.000000e+00> : vector<8x32xf32>
    %261 = tpu.matmul %251, %260, %cst_93 {dimension_numbers = #tpu.dot_dimension_numbers<[1], [0], [0], [1], [0, 0, 1, 1], [], []>} : vector<8x64xf32>, vector<64x32xf32>, vector<8x32xf32> -> vector<8x32xf32>
    %c0_94 = arith.constant 0 : index
    %c0_95 = arith.constant 0 : index
    %262 = vector.load %arg4[%c0_94, %c0_95] : memref<1x32xf32, #tpu.memory_space<vmem>>, vector<1x32xf32>
    %263 = vector.broadcast %262 : vector<1x32xf32> to vector<8x32xf32>
    %264 = arith.addf %261, %263 : vector<8x32xf32>
    %265 = math.tanh %264 : vector<8x32xf32>
    %c0_96 = arith.constant 0 : index
    %c0_97 = arith.constant 0 : index
    %266 = vector.load %arg6[%c0_96, %c0_97] : memref<8x32xf32, #tpu.memory_space<vmem>>, vector<8x32xf32>
    tpu.vector_store %arg6[%c0_96, %c0_97], %265 {strides = array<i32>} : memref<8x32xf32, #tpu.memory_space<vmem>>, vector<8x32xf32>,
    return
  }
}

</mosaic_0001>

<bundles_post_ra>
// kernel: encoder_gru_forward.1
= control target key start
LH: loop header
LB: loop body
LE: loop exit
PB: predicated region body
PF: predicated region fallthrough
CT: control target
= control target key end

     0   :  { %12 = vsyncpa [#allocation3], 0  ;;  %v1377_v7 = vmov 0.0   ;;  %s1721_s0 = inlined_call_operand.vmem [shape: f32[64,192], index: 0, kind: input, shape index: {}]   ;;  %s1722_s1 = inlined_call_operand.vmem [shape: f32[64,192], index: 1, kind: input, shape index: {}]   ;;  %s1723_s2 = inlined_call_operand.vmem [shape: f32[1,192], index: 2, kind: input, shape index: {}]   ;;  %s1724_s3 = inlined_call_operand.vmem [shape: f32[64,32], index: 3, kind: input, shape index: {}]   ;;  %s1725_s4 = inlined_call_operand.vmem [shape: f32[1,32], index: 4, kind: input, shape index: {}]   ;;  %s1726_s5 = inlined_call_operand.hbm [shape: f32[8,8,64], index: 5, kind: output, shape index: {0}]   ;;  %s1727_s6 = inlined_call_operand.hbm [shape: f32[8,32], index: 6, kind: output, shape index: {1}]  }
   0x1   :  { %v37_v0 = vld [vmem:[%s1722_s1 + $0x8] sm:$0xff]  ;;  %v39_v1 = vld [vmem:[%s1722_s1 + $0x18] sm:$0xff]  ;;  %v36_v2 = vld [vmem:[%s1722_s1] sm:$0xff]  ;;  %120 = vmatprep.mubr.f32.mxu0 %v1377_v7  ;;  %238 = vmatprep.mubr.f32.mxu1 %v1377_v7 }
   0x2   :  { %v1429_v3 = vpack.c.bf16 %v39_v1, %v37_v0  ;;  %v38_v4 = vld [vmem:[%s1722_s1 + $0x10] sm:$0xff]  ;;  %v41_v5 = vld [vmem:[%s1722_s1 + $0x28] sm:$0xff]  ;;  %v43_v6 = vld [vmem:[%s1722_s1 + $0x38] sm:$0xff] }
   0x3   :  { %v1442_v8 = vpack.c.bf16 %v38_v4, %v36_v2  ;;  %v1444_v9 = vpack.c.bf16 %v43_v6, %v41_v5  ;;  %v40_v10 = vld [vmem:[%s1722_s1 + $0x20] sm:$0xff]  ;;  %v42_v11 = vld [vmem:[%s1722_s1 + $0x30] sm:$0xff]  ;;  %v45_v12 = vld [vmem:[%s1722_s1 + $0x48] sm:$0xff] }
   0x4   :  { %1132 = vmatprep.subr.bf16.mxu0 %v1429_v3  ;;  %v47_v13 = vld [vmem:[%s1722_s1 + $0x58] sm:$0xff]  ;;  %1148 = vmatprep.subr.bf16.mxu1 %v1429_v3  ;;  %v1461_v14 = vpack.c.bf16 %v42_v11, %v40_v10  ;;  %v44_v16 = vld [vmem:[%s1722_s1 + $0x40] sm:$0xff]  ;;  %v46_v17 = vld [vmem:[%s1722_s1 + $0x50] sm:$0xff] }
   0x5   :  { %1134 = vmatpush1.bf16.msra.mxu0 %v1442_v8  ;;  %1150 = vmatpush1.bf16.msra.mxu1 %v1442_v8  ;;  %v1465_v15 = vpack.c.bf16 %v47_v13, %v45_v12 }
   0x6   :  { %1136 = vmatprep.subr.bf16.mxu0 %v1444_v9  ;;  %1152 = vmatprep.subr.bf16.mxu1 %v1444_v9 }
   0x7   :  { %13 = vsyncpa [#allocation5], 0  ;;  %v49_v18 = vld [vmem:[%s1722_s1 + $0x68] sm:$0xff]  ;;  %v51_v19 = vld [vmem:[%s1722_s1 + $0x78] sm:$0xff]  ;;  %v1481_v20 = vpack.c.bf16 %v46_v17, %v44_v16  ;;  %v26_v25 = vlaneseq  ;;  %s1378_s9 = smov 64   ;;  %vm151_vm0 = vcmask 261120  }
   0x8   :  { %v1485_v21 = vpack.c.bf16 %v51_v19, %v49_v18  ;;  %v48_v22 = vld [vmem:[%s1722_s1 + $0x60] sm:$0xff]  ;;  %v50_v23 = vld [vmem:[%s1722_s1 + $0x70] sm:$0xff]  ;;  %v128_v42 = vld [vmem:[%s1721_s0 + $0x8] sm:$0xff]  ;;  %vm154_vm1 = vcmask 523520   ;;  %vm52_vm2 = vcmask 523264   ;;  %vm1380_vm3 = vmmov 0  }
   0x9   :  { %1138 = vmatpush1.bf16.msra.mxu0 %v1461_v14  ;;  %1154 = vmatpush1.bf16.msra.mxu1 %v1461_v14  ;;  %v1495_v24 = vpack.c.bf16 %v50_v23, %v48_v22  ;;  %v27_v26 = vshrl.u32 %v26_v25, 7  ;;  %v24_v28 = vld [vmem:[%s1723_s2] sm:$0x3]  ;;  %v245_v53 = vld [vmem:[%s1721_s0 + $0x10] sm:$0xff]  ;;  %v246_v62 = vld [vmem:[%s1721_s0 + $0x18] sm:$0xff] }
   0xa   :  { %1140 = vmatprep.subr.bf16.mxu0 %v1465_v15  ;;  %1156 = vmatprep.subr.bf16.mxu1 %v1465_v15  ;;  %v127_v31 = vld [vmem:[%s1721_s0] sm:$0xff] }
   0xb   :  { %v28_v27 = vsub.s32 0, %v27_v26  ;;  %v32_v38 = vsub.s32 1, %v27_v26  ;;  %v362_v13 = vld [vmem:[%s1721_s0 + $0x20] sm:$0xff] }
   0xd   :  { %1142 = vmatpush1.bf16.msra.mxu0 %v1481_v20  ;;  %1158 = vmatpush1.bf16.msra.mxu1 %v1481_v20  ;;  %v1517_v29 = vrot.slane %v24_v28, %v28_v27  ;;  %v1523_v39 = vrot.slane %v24_v28, %v32_v38  ;;  %v363_v27 = vld [vmem:[%s1721_s0 + $0x28] sm:$0xff] }
   0xe   :  { %1144 = vmatprep.subr.bf16.mxu0 %v1485_v21  ;;  %1160 = vmatprep.subr.bf16.mxu1 %v1485_v21 }
  0x11   :  { %1146 = vmatpush1.bf16.msra.mxu0 %v1495_v24  ;;  %1162 = vmatpush1.bf16.msra.mxu1 %v1495_v24 }
  0x12   :  { %1164 = vmatprep.subr.bf16.mxu0 %v1429_v3  ;;  %1180 = vmatprep.subr.bf16.mxu1 %v1429_v3 }
  0x14   :  { %121 = vmatmul.mubr.f32.vlgmr.msra.gmra.mrb[0].mxu0 %v1377_v7 }
  0x15   :  { %1166 = vmatpush1.bf16.msra.mxu0 %v1442_v8  ;;  %355 = vmatprep.mubr.f32.mxu0 %v1377_v7 }
  0x16   :  { %1168 = vmatprep.subr.bf16.mxu0 %v1444_v9 }
  0x19   :  { %1170 = vmatpush1.bf16.msra.mxu0 %v1461_v14 }
  0x1a   :  { %1172 = vmatprep.subr.bf16.mxu0 %v1465_v15 }
  0x1d   :  { %1174 = vmatpush1.bf16.msra.mxu0 %v1481_v20 }
  0x1e   :  { %1176 = vmatprep.subr.bf16.mxu0 %v1485_v21 }
  0x21   :  { %1178 = vmatpush1.bf16.msra.mxu0 %v1495_v24 }
  0x22   :  { %1196 = vmatprep.subr.bf16.mxu0 %v1429_v3 }
  0xe7   :  { %v122_v30 = vpop.f32.mrb[0].mxu0 }
  0xe8   :  { %v123_v32 = vadd.f32 %v122_v30, %v1517_v29  ;;  %v124_v33 = vpop.f32.mrb[1].mxu0 }
  0xe9   :  { %v125_v40 = vadd.f32 %v124_v33, %v1523_v39 }
  0xea   :  { %v129_v34 = vadd.f32 %v127_v31, %v123_v32 }
  0xec   :  { %v1086_v35 = vmul.f32 -1.442695, %v129_v34 }
  0xee   :  { %1279 = vpow2.f32 %v1086_v35 }
  0xf8   :  { %v1280_v36 = vpop.eup %1279 }
  0xf9   :  { %v133_v37 = vadd.f32 1.0, %v1280_v36 }
  0xfb   :  { %1281 = vrcp.f32 %v133_v37 }
 0x105   :  { %v1282_v41 = vpop.eup %1281 }
 0x106   :  { %v136_v43 = vmul.f32 %v1282_v41, %v125_v40  ;;  %v139_v46 = vsub.f32 1.0, %v1282_v41  ;;  %v145_v48 = vmul.f32 0.0, %v1282_v41  ;;  %v479_v40 = vld [vmem:[%s1721_s0 + $0x30] sm:$0xff] }
 0x108   :  { %v137_v44 = vadd.f32 %v136_v43, %v128_v42 }
 0x10a   :  { %1283 = vtanh.f32 %v137_v44 }
 0x114   :  { %v1284_v45 = vpop.eup %1283 }
 0x115   :  { %141 = vrot.lane.b32.xlu0 %v1284_v45, %s1378_s9 }
 0x187   :  { %v142_v47 = vpop.permute.xlu0 %141 }
 0x188   :  { %v144_v49 = vmul.f32 %v142_v47, %v139_v46 }
 0x18a   :  { %v146_v50 = vadd.f32 %v145_v48, %v144_v49 }
 0x18c   :  { %148 = vrot.lane.b32.xlu0 %v146_v50, %s1378_s9 }
 0x1fe   :  { %v149_v51 = vpop.permute.xlu0 %148 }
 0x1ff   :  { %152 = vst.msk [vmem:[#allocation2] sm:$0xff] %vm151_vm0, %v149_v51  ;;  %1087 = vmatmul.mubr.msk.f32.vlgmr.msra.gmra.mrb[0].mxu1 %vm52_vm2, %v149_v51 }
 0x200   :  { %155 = vst.msk [vmem:[#allocation2 + $0x38] sm:$0xff] %vm154_vm1, %v149_v51  ;;  %1182 = vmatpush1.bf16.msra.mxu1 %v1442_v8  ;;  %472 = vmatprep.mubr.f32.mxu1 %v1377_v7 }
 0x201   :  { %1184 = vmatprep.subr.bf16.mxu1 %v1444_v9 }
 0x204   :  { %1186 = vmatpush1.bf16.msra.mxu1 %v1461_v14 }
 0x205   :  { %1188 = vmatprep.subr.bf16.mxu1 %v1465_v15 }
 0x208   :  { %1190 = vmatpush1.bf16.msra.mxu1 %v1481_v20 }
 0x209   :  { %1192 = vmatprep.subr.bf16.mxu1 %v1485_v21 }
 0x20c   :  { %1194 = vmatpush1.bf16.msra.mxu1 %v1495_v24 }
 0x20d   :  { %1212 = vmatprep.subr.bf16.mxu1 %v1429_v3 }
 0x2d2   :  { %v240_v52 = vpop.f32.mrb[0].mxu1 }
 0x2d3   :  { %v241_v54 = vadd.f32 %v240_v52, %v1517_v29  ;;  %v242_v55 = vpop.f32.mrb[1].mxu1 }
 0x2d4   :  { %v243_v60 = vadd.f32 %v242_v55, %v1523_v39 }
 0x2d5   :  { %v247_v56 = vadd.f32 %v245_v53, %v241_v54 }
 0x2d7   :  { %v1088_v57 = vmul.f32 -1.442695, %v247_v56 }
 0x2d9   :  { %1285 = vpow2.f32 %v1088_v57 }
 0x2e3   :  { %v1286_v58 = vpop.eup %1285 }
 0x2e4   :  { %v251_v59 = vadd.f32 1.0, %v1286_v58 }
 0x2e6   :  { %1287 = vrcp.f32 %v251_v59  ;;  %v596_v59 = vld [vmem:[%s1721_s0 + $0x40] sm:$0xff] }
 0x2f0   :  { %v1288_v61 = vpop.eup %1287 }
 0x2f1   :  { %v254_v63 = vmul.f32 %v1288_v61, %v243_v60  ;;  %v257_v2 = vsub.f32 1.0, %v1288_v61  ;;  %v263_v5 = vmul.f32 %v1288_v61, %v146_v50 }
 0x2f3   :  { %v255_v0 = vadd.f32 %v254_v63, %v246_v62 }
 0x2f5   :  { %1289 = vtanh.f32 %v255_v0 }
 0x2ff   :  { %v1290_v1 = vpop.eup %1289 }
 0x300   :  { %259 = vrot.lane.b32.xlu1 %v1290_v1, %s1378_s9 }
 0x372   :  { %v260_v4 = vpop.permute.xlu1 %259 }
 0x373   :  { %v262_v6 = vmul.f32 %v260_v4, %v257_v2 }
 0x375   :  { %v264_v10 = vadd.f32 %v263_v5, %v262_v6  ;;  %v597_v5 = vld [vmem:[%s1721_s0 + $0x48] sm:$0xff] }
 0x377   :  { %266 = vrot.lane.b32.xlu1 %v264_v10, %s1378_s9 }
 0x3e9   :  { %v267_v11 = vpop.permute.xlu1 %266 }
 0x3ea   :  { %270 = vst.msk [vmem:[#allocation2 + $0x8] sm:$0xff] %vm151_vm0, %v267_v11  ;;  %1089 = vmatmul.mubr.msk.f32.vlgmr.msra.gmra.mrb[2].mxu0 %vm52_vm2, %v267_v11 }
 0x3eb   :  { %272 = vst.msk [vmem:[#allocation2 + $0x30] sm:$0xff] %vm154_vm1, %v267_v11  ;;  %1198 = vmatpush1.bf16.msra.mxu0 %v1442_v8  ;;  %589 = vmatprep.mubr.f32.mxu0 %v1377_v7 }
 0x3ec   :  { %1200 = vmatprep.subr.bf16.mxu0 %v1444_v9 }
 0x3ef   :  { %1202 = vmatpush1.bf16.msra.mxu0 %v1461_v14 }
 0x3f0   :  { %1204 = vmatprep.subr.bf16.mxu0 %v1465_v15 }
 0x3f3   :  { %1206 = vmatpush1.bf16.msra.mxu0 %v1481_v20 }
 0x3f4   :  { %1208 = vmatprep.subr.bf16.mxu0 %v1485_v21 }
 0x3f7   :  { %1210 = vmatpush1.bf16.msra.mxu0 %v1495_v24 }
 0x3f8   :  { %1228 = vmatprep.subr.bf16.mxu0 %v1429_v3 }
 0x4bd   :  { %v357_v12 = vpop.f32.mrb[2].mxu0 }
 0x4be   :  { %v358_v16 = vadd.f32 %v357_v12, %v1517_v29  ;;  %v359_v17 = vpop.f32.mrb[3].mxu0 }
 0x4bf   :  { %v360_v25 = vadd.f32 %v359_v17, %v1523_v39 }
 0x4c0   :  { %v364_v18 = vadd.f32 %v362_v13, %v358_v16 }
 0x4c2   :  { %v1090_v19 = vmul.f32 -1.442695, %v364_v18 }
 0x4c4   :  { %1291 = vpow2.f32 %v1090_v19 }
 0x4ce   :  { %v1292_v22 = vpop.eup %1291 }
 0x4cf   :  { %v368_v23 = vadd.f32 1.0, %v1292_v22 }
 0x4d1   :  { %1293 = vrcp.f32 %v368_v23  ;;  %v711_v23 = vld [vmem:[%s1721_s0 + $0x50] sm:$0xff] }
 0x4db   :  { %v1294_v26 = vpop.eup %1293 }
 0x4dc   :  { %v371_v28 = vmul.f32 %v1294_v26, %v360_v25  ;;  %v374_v32 = vsub.f32 1.0, %v1294_v26  ;;  %v380_v34 = vmul.f32 %v1294_v26, %v264_v10 }
 0x4de   :  { %v372_v30 = vadd.f32 %v371_v28, %v363_v27 }
 0x4e0   :  { %1295 = vtanh.f32 %v372_v30 }
 0x4ea   :  { %v1296_v31 = vpop.eup %1295 }
 0x4eb   :  { %376 = vrot.lane.b32.xlu0 %v1296_v31, %s1378_s9 }
 0x55d   :  { %v377_v33 = vpop.permute.xlu0 %376 }
 0x55e   :  { %v379_v35 = vmul.f32 %v377_v33, %v374_v32 }
 0x560   :  { %v381_v36 = vadd.f32 %v380_v34, %v379_v35 }
 0x562   :  { %383 = vrot.lane.b32.xlu1 %v381_v36, %s1378_s9 }
 0x5d4   :  { %v384_v37 = vpop.permute.xlu1 %383 }
 0x5d5   :  { %387 = vst.msk [vmem:[#allocation2 + $0x10] sm:$0xff] %vm151_vm0, %v384_v37  ;;  %1091 = vmatmul.mubr.msk.f32.vlgmr.msra.gmra.mrb[2].mxu1 %vm52_vm2, %v384_v37 }
 0x5d6   :  { %389 = vst.msk [vmem:[#allocation2 + $0x28] sm:$0xff] %vm154_vm1, %v384_v37  ;;  %1214 = vmatpush1.bf16.msra.mxu1 %v1442_v8  ;;  %704 = vmatprep.mubr.f32.mxu1 %v1377_v7 }
 0x5d7   :  { %1216 = vmatprep.subr.bf16.mxu1 %v1444_v9 }
 0x5da   :  { %1218 = vmatpush1.bf16.msra.mxu1 %v1461_v14 }
 0x5db   :  { %1220 = vmatprep.subr.bf16.mxu1 %v1465_v15 }
 0x5de   :  { %1222 = vmatpush1.bf16.msra.mxu1 %v1481_v20 }
 0x5df   :  { %1224 = vmatprep.subr.bf16.mxu1 %v1485_v21 }
 0x5e2   :  { %1226 = vmatpush1.bf16.msra.mxu1 %v1495_v24 }
 0x5e3   :  { %1244 = vmatprep.subr.bf16.mxu1 %v1429_v3  ;;  %v480_v3 = vld [vmem:[%s1721_s0 + $0x38] sm:$0xff] }
 0x6a8   :  { %v474_v38 = vpop.f32.mrb[2].mxu1 }
 0x6a9   :  { %v475_v41 = vadd.f32 %v474_v38, %v1517_v29  ;;  %v476_v42 = vpop.f32.mrb[3].mxu1  ;;  %v826_v38 = vld [vmem:[%s1721_s0 + $0x60] sm:$0xff] }
 0x6aa   :  { %v477_v47 = vadd.f32 %v476_v42, %v1523_v39 }
 0x6ab   :  { %v481_v43 = vadd.f32 %v479_v40, %v475_v41 }
 0x6ad   :  { %v1092_v44 = vmul.f32 -1.442695, %v481_v43 }
 0x6af   :  { %1297 = vpow2.f32 %v1092_v44 }
 0x6b9   :  { %v1298_v45 = vpop.eup %1297 }
 0x6ba   :  { %v485_v46 = vadd.f32 1.0, %v1298_v45 }
 0x6bc   :  { %1299 = vrcp.f32 %v485_v46 }
 0x6c6   :  { %v1300_v48 = vpop.eup %1299 }
 0x6c7   :  { %v488_v49 = vmul.f32 %v1300_v48, %v477_v47  ;;  %v491_v52 = vsub.f32 1.0, %v1300_v48  ;;  %v497_v54 = vmul.f32 %v1300_v48, %v381_v36  ;;  %v827_v48 = vld [vmem:[%s1721_s0 + $0x68] sm:$0xff] }
 0x6c9   :  { %v489_v50 = vadd.f32 %v488_v49, %v480_v3 }
 0x6cb   :  { %1301 = vtanh.f32 %v489_v50 }
 0x6d5   :  { %v1302_v51 = vpop.eup %1301 }
 0x6d6   :  { %493 = vrot.lane.b32.xlu0 %v1302_v51, %s1378_s9 }
 0x748   :  { %v494_v53 = vpop.permute.xlu0 %493 }
 0x749   :  { %v496_v55 = vmul.f32 %v494_v53, %v491_v52 }
 0x74b   :  { %v498_v56 = vadd.f32 %v497_v54, %v496_v55 }
 0x74d   :  { %500 = vrot.lane.b32.xlu1 %v498_v56, %s1378_s9 }
 0x7bf   :  { %v501_v57 = vpop.permute.xlu1 %500 }
 0x7c0   :  { %504 = vst.msk [vmem:[#allocation2 + $0x18] sm:$0xff] %vm151_vm0, %v501_v57  ;;  %1093 = vmatmul.mubr.msk.f32.vlgmr.msra.gmra.mrb[4].mxu0 %vm52_vm2, %v501_v57 }
 0x7c1   :  { %506 = vst.msk [vmem:[#allocation2 + $0x20] sm:$0xff] %vm154_vm1, %v501_v57  ;;  %1230 = vmatpush1.bf16.msra.mxu0 %v1442_v8  ;;  %819 = vmatprep.mubr.f32.mxu0 %v1377_v7 }
 0x7c2   :  { %1232 = vmatprep.subr.bf16.mxu0 %v1444_v9 }
 0x7c5   :  { %1234 = vmatpush1.bf16.msra.mxu0 %v1461_v14 }
 0x7c6   :  { %1236 = vmatprep.subr.bf16.mxu0 %v1465_v15 }
 0x7c9   :  { %1238 = vmatpush1.bf16.msra.mxu0 %v1481_v20 }
 0x7ca   :  { %1240 = vmatprep.subr.bf16.mxu0 %v1485_v21 }
 0x7cd   :  { %1242 = vmatpush1.bf16.msra.mxu0 %v1495_v24 }
 0x893   :  { %v591_v58 = vpop.f32.mrb[4].mxu0 }
 0x894   :  { %v592_v60 = vadd.f32 %v591_v58, %v1517_v29  ;;  %v593_v61 = vpop.f32.mrb[5].mxu0  ;;  %v941_v58 = vld [vmem:[%s1721_s0 + $0x70] sm:$0xff] }
 0x895   :  { %v594_v2 = vadd.f32 %v593_v61, %v1523_v39 }
 0x896   :  { %v598_v62 = vadd.f32 %v596_v59, %v592_v60 }
 0x898   :  { %v1094_v63 = vmul.f32 -1.442695, %v598_v62 }
 0x89a   :  { %1303 = vpow2.f32 %v1094_v63 }
 0x8a4   :  { %v1304_v0 = vpop.eup %1303 }
 0x8a5   :  { %v602_v1 = vadd.f32 1.0, %v1304_v0 }
 0x8a7   :  { %1305 = vrcp.f32 %v602_v1 }
 0x8b1   :  { %v1306_v4 = vpop.eup %1305 }
 0x8b2   :  { %v605_v6 = vmul.f32 %v1306_v4, %v594_v2  ;;  %v608_v12 = vsub.f32 1.0, %v1306_v4  ;;  %v614_v16 = vmul.f32 %v1306_v4, %v498_v56  ;;  %v942_v4 = vld [vmem:[%s1721_s0 + $0x78] sm:$0xff] }
 0x8b4   :  { %v606_v10 = vadd.f32 %v605_v6, %v597_v5 }
 0x8b6   :  { %1307 = vtanh.f32 %v606_v10  ;;  %v968_v10 = vld [vmem:[%s1724_s3 + $0x8] sm:$0xff] }
 0x8c0   :  { %v1308_v11 = vpop.eup %1307 }
 0x8c1   :  { %610 = vrot.lane.b32.xlu0 %v1308_v11, %s1378_s9  ;;  %v1379_v11 = vmov 0.0|0.0  }
 0x8c2   :  { %1259 = vmatprep.subr.bf16.mxu0 %v1379_v11 }
 0x933   :  { %v611_v13 = vpop.permute.xlu0 %610 }
 0x934   :  { %v613_v17 = vmul.f32 %v611_v13, %v608_v12  ;;  %v970_v13 = vld [vmem:[%s1724_s3 + $0x18] sm:$0xff] }
 0x936   :  { %v615_v18 = vadd.f32 %v614_v16, %v613_v17  ;;  %v971_v17 = vld [vmem:[%s1724_s3 + $0x20] sm:$0xff] }
 0x938   :  { %617 = vrot.lane.b32.xlu1 %v615_v18, %s1378_s9 }
 0x9aa   :  { %v618_v19 = vpop.permute.xlu1 %617 }
 0x9ab   :  { %620 = vst.msk [vmem:[#allocation2 + $0x20] sm:$0xff] %vm151_vm0, %v618_v19  ;;  %1095 = vmatmul.mubr.msk.f32.vlgmr.msra.gmra.mrb[4].mxu1 %vm52_vm2, %v618_v19 }
 0x9ac   :  { %621 = vst.msk [vmem:[#allocation2 + $0x18] sm:$0xff] %vm154_vm1, %v618_v19  ;;  %1246 = vmatpush1.bf16.msra.mxu1 %v1442_v8  ;;  %934 = vmatprep.mubr.f32.mxu1 %v1377_v7 }
 0x9ad   :  { %1248 = vmatprep.subr.bf16.mxu1 %v1444_v9 }
 0x9b0   :  { %1250 = vmatpush1.bf16.msra.mxu1 %v1461_v14 }
 0x9b1   :  { %1252 = vmatprep.subr.bf16.mxu1 %v1465_v15 }
 0x9b4   :  { %1254 = vmatpush1.bf16.msra.mxu1 %v1481_v20 }
 0x9b5   :  { %1256 = vmatprep.subr.bf16.mxu1 %v1485_v21  ;;  %v712_v21 = vld [vmem:[%s1721_s0 + $0x58] sm:$0xff] }
 0x9b8   :  { %1258 = vmatpush1.bf16.msra.mxu1 %v1495_v24 }
 0xa7e   :  { %v706_v22 = vpop.f32.mrb[4].mxu1 }
 0xa7f   :  { %v707_v8 = vadd.f32 %v706_v22, %v1517_v29  ;;  %v708_v25 = vpop.f32.mrb[5].mxu1 }
 0xa80   :  { %v709_v15 = vadd.f32 %v708_v25, %v1523_v39 }
 0xa81   :  { %v713_v26 = vadd.f32 %v711_v23, %v707_v8  ;;  %v973_v23 = vld [vmem:[%s1724_s3 + $0x30] sm:$0xff] }
 0xa83   :  { %v1096_v9 = vmul.f32 -1.442695, %v713_v26 }
 0xa85   :  { %1309 = vpow2.f32 %v1096_v9 }
 0xa8f   :  { %v1310_v14 = vpop.eup %1309 }
 0xa90   :  { %v717_v27 = vadd.f32 1.0, %v1310_v14 }
 0xa92   :  { %1311 = vrcp.f32 %v717_v27 }
 0xa9c   :  { %v1312_v20 = vpop.eup %1311 }
 0xa9d   :  { %v720_v24 = vmul.f32 %v1312_v20, %v709_v15  ;;  %v723_v31 = vsub.f32 1.0, %v1312_v20  ;;  %v729_v33 = vmul.f32 %v1312_v20, %v615_v18  ;;  %v972_v18 = vld [vmem:[%s1724_s3 + $0x28] sm:$0xff] }
 0xa9e   :  { %v1266_v19 = vpack.c.bf16 %v972_v18, %v971_v17 }
 0xa9f   :  { %v721_v28 = vadd.f32 %v720_v24, %v712_v21 }
 0xaa1   :  { %1313 = vtanh.f32 %v721_v28 }
 0xaab   :  { %v1314_v30 = vpop.eup %1313 }
 0xaac   :  { %725 = vrot.lane.b32.xlu0 %v1314_v30, %s1378_s9 }
 0xb1e   :  { %v726_v32 = vpop.permute.xlu0 %725 }
 0xb1f   :  { %v728_v34 = vmul.f32 %v726_v32, %v723_v31 }
 0xb21   :  { %v730_v35 = vadd.f32 %v729_v33, %v728_v34 }
 0xb23   :  { %732 = vrot.lane.b32.xlu1 %v730_v35, %s1378_s9 }
 0xb95   :  { %v733_v36 = vpop.permute.xlu1 %732 }
 0xb96   :  { %735 = vst.msk [vmem:[#allocation2 + $0x28] sm:$0xff] %vm151_vm0, %v733_v36  ;;  %1097 = vmatmul.mubr.msk.f32.vlgmr.msra.gmra.mrb[6].mxu0 %vm52_vm2, %v733_v36 }
 0xb97   :  { %736 = vst.msk [vmem:[#allocation2 + $0x10] sm:$0xff] %vm154_vm1, %v733_v36  ;;  %1128 = vmatprep.mubr.msk.f32.mxu0 %vm1380_vm3, %v1377_v7  ;;  %v974_v7 = vld [vmem:[%s1724_s3 + $0x38] sm:$0xff] }
 0xb98   :  { %v1269_v8 = vpack.c.bf16 %v974_v7, %v973_v23 }
 0xc69   :  { %v821_v37 = vpop.f32.mrb[6].mxu0 }
 0xc6a   :  { %v822_v40 = vadd.f32 %v821_v37, %v1517_v29  ;;  %v823_v41 = vpop.f32.mrb[7].mxu0 }
 0xc6b   :  { %v824_v46 = vadd.f32 %v823_v41, %v1523_v39 }
 0xc6c   :  { %v828_v42 = vadd.f32 %v826_v38, %v822_v40 }
 0xc6e   :  { %v1098_v43 = vmul.f32 -1.442695, %v828_v42 }
 0xc70   :  { %1315 = vpow2.f32 %v1098_v43 }
 0xc7a   :  { %v1316_v44 = vpop.eup %1315 }
 0xc7b   :  { %v832_v45 = vadd.f32 1.0, %v1316_v44 }
 0xc7d   :  { %1317 = vrcp.f32 %v832_v45 }
 0xc87   :  { %v1318_v47 = vpop.eup %1317 }
 0xc88   :  { %v835_v3 = vmul.f32 %v1318_v47, %v824_v46  ;;  %v838_v51 = vsub.f32 1.0, %v1318_v47  ;;  %v844_v53 = vmul.f32 %v1318_v47, %v730_v35 }
 0xc8a   :  { %v836_v49 = vadd.f32 %v835_v3, %v827_v48 }
 0xc8c   :  { %1319 = vtanh.f32 %v836_v49 }
 0xc96   :  { %v1320_v50 = vpop.eup %1319 }
 0xc97   :  { %840 = vrot.lane.b32.xlu0 %v1320_v50, %s1378_s9 }
 0xd09   :  { %v841_v52 = vpop.permute.xlu0 %840 }
 0xd0a   :  { %v843_v54 = vmul.f32 %v841_v52, %v838_v51 }
 0xd0c   :  { %v845_v55 = vadd.f32 %v844_v53, %v843_v54 }
 0xd0e   :  { %847 = vrot.lane.b32.xlu1 %v845_v55, %s1378_s9 }
 0xd80   :  { %v848_v56 = vpop.permute.xlu1 %847 }
 0xd81   :  { %850 = vst.msk [vmem:[#allocation2 + $0x30] sm:$0xff] %vm151_vm0, %v848_v56  ;;  %1099 = vmatmul.mubr.msk.f32.vlgmr.msra.gmra.mrb[6].mxu1 %vm52_vm2, %v848_v56 }
 0xd82   :  { %851 = vst.msk [vmem:[#allocation2 + $0x8] sm:$0xff] %vm154_vm1, %v848_v56 }
 0xe54   :  { %v936_v57 = vpop.f32.mrb[6].mxu1 }
 0xe55   :  { %v937_v59 = vadd.f32 %v936_v57, %v1517_v29  ;;  %v938_v60 = vpop.f32.mrb[7].mxu1  ;;  %v967_v29 = vld [vmem:[%s1724_s3] sm:$0xff] }
 0xe56   :  { %v939_v1 = vadd.f32 %v938_v60, %v1523_v39  ;;  %v969_v39 = vld [vmem:[%s1724_s3 + $0x10] sm:$0xff]  ;;  %v1260_v12 = vpack.c.bf16 %v968_v10, %v967_v29  ;;  %s1381_s3 = smov [#allocation2]  }
 0xe57   :  { %v943_v61 = vadd.f32 %v941_v58, %v937_v59  ;;  %v1263_v16 = vpack.c.bf16 %v970_v13, %v969_v39  ;;  %s1061_s28 = sshll.u32 %s1381_s3, 4  ;;  %s1062_s28 = int_to_ptr.vmem [resolvable:$true] %s1061_s28 }
 0xe58   :  { %1261 = vmatpush3.bf16.msra.mxu0 %v1260_v12  ;;  %s1329_s1 = scalar_lea.vmem %s1062_s28, 1024  ;;  %p1334_p1 = scmp.lt.s32.totalorder %s1062_s28, %s1062_s28 }
 0xe59   :  { %v1100_v62 = vmul.f32 -1.442695, %v943_v61  ;;  %1262 = vmatprep.subr.bf16.mxu0 %v1379_v11  ;;  %p1330_p0 = scmp.ne.s32.totalorder %s1062_s28, %s1329_s1  ;;  %p1335_p2 = scmp.lt.s32.totalorder %s1329_s1, %s1329_s1 }
 0xe5b   :  { %1321 = vpow2.f32 %v1100_v62  ;;  %p1336_p3 = por %p1335_p2, %p1334_p1 }
 0xe5c   :  { %1264 = vmatpush3.bf16.msra.mxu0 %v1263_v16 }
 0xe5d   :  { %1265 = vmatprep.subr.bf16.mxu0 %v1379_v11  ;;  %p1337_p4 = pnand %p1336_p3, %p1330_p0 }
 0xe60   :  { %1267 = vmatpush3.bf16.msra.mxu0 %v1266_v19 }
 0xe61   :  { %1268 = vmatprep.subr.bf16.mxu0 %v1379_v11 }
 0xe64   :  { %1270 = vmatpush3.bf16.msra.mxu0 %v1269_v8 }
 0xe65   :  { %v1322_v63 = vpop.eup %1321 }
 0xe66   :  { %v947_v0 = vadd.f32 1.0, %v1322_v63 }
 0xe68   :  { %1323 = vrcp.f32 %v947_v0 }
 0xe72   :  { %v1324_v2 = vpop.eup %1323 }
 0xe73   :  { %v950_v5 = vmul.f32 %v1324_v2, %v939_v1  ;;  %v953_v25 = vsub.f32 1.0, %v1324_v2  ;;  %v959_v9 = vmul.f32 %v1324_v2, %v845_v55 }
 0xe75   :  { %v951_v6 = vadd.f32 %v950_v5, %v942_v4 }
 0xe77   :  { %1325 = vtanh.f32 %v951_v6 }
 0xe81   :  { %v1326_v22 = vpop.eup %1325 }
 0xe82   :  { %955 = vrot.lane.b32.xlu0 %v1326_v22, %s1378_s9 }
 0xef4   :  { %v956_v26 = vpop.permute.xlu0 %955 }
 0xef5   :  { %v958_v14 = vmul.f32 %v956_v26, %v953_v25 }
 0xef7   :  { %v960_v27 = vadd.f32 %v959_v9, %v958_v14 }
 0xef9   :  { %962 = vrot.lane.b32.xlu1 %v960_v27, %s1378_s9 }
 0xf6b   :  { %v963_v15 = vpop.permute.xlu1 %962 }
 0xf6c   :  { %965 = vst.msk [vmem:[#allocation2 + $0x38] sm:$0xff] %vm151_vm0, %v963_v15  ;;  %1129 = vmatmul.mubr.msk.f32.vlgmr.msra.gmra.mrb[8].mxu0 %vm52_vm2, %v963_v15 }
 0xf6d   :  { %966 = vst.msk [vmem:[#allocation2] sm:$0xff] %vm154_vm1, %v963_v15 }
 0xf6e   :  { %1340 = shalt.err (!%p1337_p4)
}
 0xf6f   :  { %s1341_s9 = scalar_lea.hbm %s1726_s5, 1024 }
 0xf70   :  { %p1342_p5 = scmp.ne.s32.totalorder %s1726_s5, %s1341_s9  ;;  %p1345_p6 = scmp.lt.u32.totalorder %s1341_s9, %s1726_s5 }
 0xf72   :  { %p1347_p7 = pnand %p1345_p6, %p1342_p5 }
 0xf74   :  { %1350 = shalt.err (!%p1347_p7)
}
 0xf75   :  { %s1382_s11 = smov 128   ;;  %s1383_s12 = smov 8   ;;  %v1101_v20 = vld [vmem:[%s1725_s4] ss:$0 sm:$0xff] }
 0xf76   :  { %1067 = dma.vmem_to_hbm [thread:$0]  %s1062_s28, 1024, %s1726_s5, [#allocation3], %s1382_s11, %s1382_s11, %s1383_s12  }
 0xf77   :  { %s1384_s17 = smov [#allocation4]  }
 0xf78   :  { %s1074_s18 = sshll.u32 %s1384_s17, 4  ;;  %s1075_s18 = int_to_ptr.vmem [resolvable:$true] %s1074_s18 }
 0xf79   :  { %s1351_s19 = scalar_lea.vmem %s1075_s18, 128  ;;  %p1356_p9 = scmp.lt.s32.totalorder %s1075_s18, %s1075_s18 }
 0xf7a   :  { %p1352_p8 = scmp.ne.s32.totalorder %s1075_s18, %s1351_s19  ;;  %p1357_p10 = scmp.lt.s32.totalorder %s1351_s19, %s1351_s19 }
 0xf7c   :  { %p1358_p11 = por %p1357_p10, %p1356_p9 }
 0xf7e   :  { %p1359_p12 = pnand %p1358_p11, %p1352_p8 }
0x103f   :  { %v1050_v21 = vpop.f32.mrb[8].mxu0 }
0x1040   :  { %v1051_v24 = vadd.f32 %v1101_v20, %v1050_v21  ;;  %v1130_v28 = vpop.f32.mrb[9].mxu0 }
0x1042   :  { %1327 = vtanh.f32 %v1051_v24 }
0x104c   :  { %v1328_v30 = vpop.eup %1327 }
0x104d   :  { %1055 = vst.msk [vmem:[#allocation4] sm:$0xff] %vm151_vm0, %v1328_v30 }
0x104e   :  { %1362 = shalt.err (!%p1359_p12)
}
0x104f   :  { %s1363_s4 = scalar_lea.hbm %s1727_s6, 128 }
0x1050   :  { %p1364_p13 = scmp.ne.s32.totalorder %s1727_s6, %s1363_s4  ;;  %p1367_p0 = scmp.lt.u32.totalorder %s1363_s4, %s1727_s6 }
0x1052   :  { %p1369_p1 = pnand %p1367_p0, %p1364_p13 }
0x1054   :  { %1372 = shalt.err (!%p1369_p1)
}
0x1055   :  { %1077 = dma.vmem_to_hbm [thread:$0]  %s1075_s18, 128, %s1727_s6, [#allocation5]  }
0x1056   :  { %1373 = dma.done.wait [#allocation3], 1024  }
0x1057   :  { %1374 = vsyncadd [#allocation3], 4294966272 }
0x1058   :  { %1375 = dma.done.wait [#allocation5], 128  }
0x1059   :  { %1376 = vsyncadd [#allocation5], 4294967168 }
0x105a   :  { %1084 = vsyncpa [#allocation3], 1 }
0x105b   :  { %1085 = vsyncpa [#allocation5], 1 }

</bundles_post_ra>
